<compile_context>
chip_gen: v5e
topology: v5e:2x2
jax: 0.10.0
libtpu: 0.0.40
codegen_flags: <defaults>
</compile_context>

<pallas_src>
import functools

import jax
import jax.numpy as jnp
from jax.experimental import pallas as pl
from jax.experimental.pallas import tpu as pltpu

_EPS = 1e-6  # matches torch.pairwise_distance default eps

# Budget for the 3 inputs x 2 pipeline buffers worth of batch tiles (bytes).
# Conservative so the same tile compiles on v5e / v6e (128 MiB VMEM) and
# v7x (64 MiB physical VMEM).
_INPUT_VMEM_BUDGET = 24 * 1024 * 1024
_VMEM_LIMIT_BYTES = 48 * 1024 * 1024


def _mrl_triplet_kernel(a_ref, p_ref, n_ref, maskt_ref, o_ref, *,
                        margin, true_batch, tb, apply_row_mask):
    # Up-cast after the DMA so bf16 inputs travel at half the HBM bytes but
    # all math matches the f32 PyTorch reference.
    a = a_ref[...].astype(jnp.float32)       # (TB, D)
    p = p_ref[...].astype(jnp.float32)       # (TB, D)
    n = n_ref[...].astype(jnp.float32)       # (TB, D)
    maskt = maskt_ref[...]                   # (D, Kp) f32, resident

    dp = a - p + _EPS
    dn = a - n + _EPS

    # Fused prefix sums on the MXU: stack pos/neg along M, one (2*TB,D)@(D,Kp).
    sq = jnp.concatenate([dp * dp, dn * dn], axis=0)                  # (2TB, D)
    sums = jnp.dot(sq, maskt, preferred_element_type=jnp.float32)     # (2TB, Kp)

    pos_dist = jnp.sqrt(sums[:tb])
    neg_dist = jnp.sqrt(sums[tb:])
    loss = jnp.maximum(pos_dist - neg_dist + margin, 0.0)             # (TB, Kp)

    if apply_row_mask:
        row = (jax.lax.broadcasted_iota(jnp.int32, loss.shape, 0)
               + pl.program_id(0) * tb)
        loss = jnp.where(row < true_batch, loss, 0.0)

    # Per-tile, per-prefix partial loss sums; lane-dense (1, 1, Kp) store.
    o_ref[...] = jnp.sum(loss, axis=0, keepdims=True)[None]


def _choose_batch_tile(batch, dim, itemsize):
    tb = _INPUT_VMEM_BUDGET // (3 * 2 * dim * itemsize)
    tb = min(int(tb), 1024)
    tb = max(8, (tb // 8) * 8)
    if tb >= batch:
        return batch  # single block spanning the full batch
    return tb


def mrl_triplet_loss(anchor, positive, negative, *, margin=1.0,
                     nested_dims=(), loss_weights=None, block_b=None):
    """JAX/Pallas equivalent of MRLTripletLoss.forward. Returns a scalar."""
    B, D = anchor.shape
    assert positive.shape == (B, D) and negative.shape == (B, D)

    num_losses = 1 + len(nested_dims)
    if loss_weights is None:
        loss_weights = [1.0] * num_losses
    assert len(loss_weights) == num_losses
    weight_sum = float(sum(loss_weights))

    # (prefix_dim, weight) pairs, skipping prefixes >= D exactly like the
    # PyTorch loop (skipped prefixes still contribute to weight_sum).
    dims = [D]
    weights = [float(loss_weights[0])]
    for i, d_prefix in enumerate(nested_dims):
        if d_prefix >= D:
            continue
        dims.append(int(d_prefix))
        weights.append(float(loss_weights[i + 1]))
    K = len(dims)
    Kp = 128 * pl.cdiv(K, 128)  # lane-pad the prefix axis

    # Transposed, lane-padded prefix mask built at trace time: (D, Kp),
    # maskt[j, k] = 1.0 iff j < dims[k]; padded columns are all-zero.
    col = jnp.arange(D, dtype=jnp.int32)[:, None]            # (D, 1)
    dvec = jnp.asarray(dims, dtype=jnp.int32)[None, :]       # (1, K)
    maskt = (col < dvec).astype(jnp.float32)                 # (D, K)
    if Kp > K:
        maskt = jnp.pad(maskt, ((0, 0), (0, Kp - K)))        # (D, Kp)

    itemsize = jnp.dtype(anchor.dtype).itemsize
    tb = int(block_b) if block_b is not None else _choose_batch_tile(B, D, itemsize)
    tb = min(tb, B)
    if tb < B:
        tb = max(8, (tb // 8) * 8)
        b_pad = tb * pl.cdiv(B, tb)
    else:
        tb = B
        b_pad = B
    num_tiles = b_pad // tb

    if b_pad != B:
        pad = ((0, b_pad - B), (0, 0))
        anchor = jnp.pad(anchor, pad)
        positive = jnp.pad(positive, pad)
        negative = jnp.pad(negative, pad)

    kernel = functools.partial(
        _mrl_triplet_kernel, margin=float(margin), true_batch=B, tb=tb,
        apply_row_mask=(b_pad != B))

    emb_spec = pl.BlockSpec((tb, D), lambda i: (i, 0))
    mask_spec = pl.BlockSpec((D, Kp), lambda i: (0, 0))      # resident across tiles
    out_spec = pl.BlockSpec((1, 1, Kp), lambda i: (i, 0, 0))

    cost = pl.CostEstimate(
        flops=int(2 * (2 * b_pad) * D * Kp + 8 * b_pad * D),
        transcendentals=int(2 * b_pad * Kp),
        bytes_accessed=int(3 * b_pad * D * itemsize + D * Kp * 4
                           + num_tiles * Kp * 4),
    )

    partial = pl.pallas_call(
        kernel,
        out_shape=jax.ShapeDtypeStruct((num_tiles, 1, Kp), jnp.float32),
        grid=(num_tiles,),
        in_specs=[emb_spec, emb_spec, emb_spec, mask_spec],
        out_specs=out_spec,
        compiler_params=pltpu.CompilerParams(
            dimension_semantics=("parallel",),
            vmem_limit_bytes=_VMEM_LIMIT_BYTES),
        cost_estimate=cost,
    )(anchor, positive, negative, maskt)

    # Tiny final reduction in plain JAX: mean over batch, weighted sum over
    # prefixes, normalize by the weight sum.
    per_prefix = jnp.sum(partial[:, 0, :K], axis=0) / jnp.float32(B)   # (K,)
    w = jnp.asarray(weights, dtype=jnp.float32)
    return jnp.sum(per_prefix * w) / jnp.float32(weight_sum)


def _reference(anchor, positive, negative, *, margin, nested_dims, loss_weights):
    """Pure-JAX reference mirroring the PyTorch code."""
    anchor = anchor.astype(jnp.float32)
    positive = positive.astype(jnp.float32)
    negative = negative.astype(jnp.float32)

    def triplet(a, p, n):
        pd = jnp.sqrt(jnp.sum((a - p + _EPS) ** 2, axis=-1))
        nd = jnp.sqrt(jnp.sum((a - n + _EPS) ** 2, axis=-1))
        return jnp.mean(jnp.maximum(pd - nd + margin, 0.0))

    num_losses = 1 + len(nested_dims)
    if loss_weights is None:
        loss_weights = [1.0] * num_losses
    total = loss_weights[0] * triplet(anchor, positive, negative)
    for i, d in enumerate(nested_dims):
        if d >= anchor.shape[-1]:
            continue
        total = total + loss_weights[i + 1] * triplet(
            anchor[:, :d], positive[:, :d], negative[:, :d])
    return total / sum(loss_weights)


if __name__ == "__main__":
    key = jax.random.PRNGKey(0)

    # Test 1: small shapes, single batch tile.
    k1, k2, k3 = jax.random.split(key, 3)
    B, D = 8, 32
    nested_dims = [8, 16]
    margin = 1.0
    anchor = jax.random.normal(k1, (B, D), dtype=jnp.float32)
    positive = jax.random.normal(k2, (B, D), dtype=jnp.float32)
    negative = jax.random.normal(k3, (B, D), dtype=jnp.float32)

    loss = mrl_triplet_loss(anchor, positive, negative, margin=margin,
                            nested_dims=nested_dims, loss_weights=None)
    loss = jax.block_until_ready(loss)
    ref = _reference(anchor, positive, negative, margin=margin,
                     nested_dims=nested_dims, loss_weights=None)
    assert jnp.allclose(loss, ref, atol=1e-4, rtol=1e-4), (loss, ref)

    # Test 2: multi-tile grid with a ragged batch (forces host padding + the
    # in-kernel row mask), non-uniform weights, and one skipped prefix (>= D).
    k4, k5, k6 = jax.random.split(jax.random.PRNGKey(1), 3)
    B2, D2 = 20, 256
    nested2 = [32, 64, 512]                 # 512 >= D2 -> skipped like torch
    weights2 = [1.0, 0.5, 0.25, 0.25]
    margin2 = 0.5
    a2 = jax.random.normal(k4, (B2, D2), dtype=jnp.float32)
    p2 = jax.random.normal(k5, (B2, D2), dtype=jnp.float32)
    n2 = jax.random.normal(k6, (B2, D2), dtype=jnp.float32)

    loss2 = mrl_triplet_loss(a2, p2, n2, margin=margin2, nested_dims=nested2,
                             loss_weights=weights2, block_b=8)
    loss2 = jax.block_until_ready(loss2)
    ref2 = _reference(a2, p2, n2, margin=margin2, nested_dims=nested2,
                      loss_weights=weights2)
    assert jnp.allclose(loss2, ref2, atol=1e-4, rtol=1e-4), (loss2, ref2)

    print("KERNEL_OK")
</pallas_src>

<mosaic_0001>
module attributes {stable_mosaic.version = 11 : i64} {
  func.func @_mrl_triplet_kernel(%arg0: i32, %arg1: memref<8x32xf32, #tpu.memory_space<vmem>>, %arg2: memref<8x32xf32, #tpu.memory_space<vmem>>, %arg3: memref<8x32xf32, #tpu.memory_space<vmem>>, %arg4: memref<32x128xf32, #tpu.memory_space<vmem>>, %arg5: memref<1x1x128xf32, #tpu.memory_space<vmem>>) attributes {dimension_semantics = [#tpu.dimension_semantics<parallel>], iteration_bounds = array<i64: 1>, scalar_prefetch = 0 : i64, scratch_operands = 0 : i64, tpu.core_type = #tpu.core_type<tc>, window_params = [{transform_indices = @transform_0, window_bounds = array<i64: 8, 32>}, {transform_indices = @transform_1, window_bounds = array<i64: 8, 32>}, {transform_indices = @transform_2, window_bounds = array<i64: 8, 32>}, {pipeline_mode = #tpu.pipeline_mode<synchronous>, transform_indices = @transform_3, window_bounds = array<i64: 32, 128>}, {transform_indices = @transform_4, window_bounds = array<i64: 1, 1, 128>}]} {
    %c0 = arith.constant 0 : index
    %c0_0 = arith.constant 0 : index
    %0 = vector.load %arg1[%c0, %c0_0] : memref<8x32xf32, #tpu.memory_space<vmem>>, vector<8x32xf32>
    %c0_1 = arith.constant 0 : index
    %c0_2 = arith.constant 0 : index
    %1 = vector.load %arg2[%c0_1, %c0_2] : memref<8x32xf32, #tpu.memory_space<vmem>>, vector<8x32xf32>
    %c0_3 = arith.constant 0 : index
    %c0_4 = arith.constant 0 : index
    %2 = vector.load %arg3[%c0_3, %c0_4] : memref<8x32xf32, #tpu.memory_space<vmem>>, vector<8x32xf32>
    %c0_5 = arith.constant 0 : index
    %c0_6 = arith.constant 0 : index
    %3 = vector.load %arg4[%c0_5, %c0_6] : memref<32x128xf32, #tpu.memory_space<vmem>>, vector<32x128xf32>
    %4 = arith.subf %0, %1 : vector<8x32xf32>
    %cst = arith.constant 9.99999997E-7 : f32
    %5 = vector.broadcast %cst : f32 to vector<8x32xf32>
    %6 = arith.addf %4, %5 : vector<8x32xf32>
    %7 = arith.subf %0, %2 : vector<8x32xf32>
    %cst_7 = arith.constant 9.99999997E-7 : f32
    %8 = vector.broadcast %cst_7 : f32 to vector<8x32xf32>
    %9 = arith.addf %7, %8 : vector<8x32xf32>
    %10 = arith.mulf %6, %6 : vector<8x32xf32>
    %11 = arith.mulf %9, %9 : vector<8x32xf32>
    %12 = tpu.concatenate %10, %11 in 0 : vector<8x32xf32>, vector<8x32xf32> -> vector<16x32xf32>
    %cst_8 = arith.constant dense<0.000000e+00> : vector<16x128xf32>
    %13 = tpu.matmul %12, %3, %cst_8 {dimension_numbers = #tpu.dot_dimension_numbers<[1], [0], [0], [1], [0, 0, 1, 1], [], []>} : vector<16x32xf32>, vector<32x128xf32>, vector<16x128xf32> -> vector<16x128xf32>
    %14 = vector.extract_strided_slice %13 {offsets = [0, 0], sizes = [8, 128], strides = [1, 1]} : vector<16x128xf32> to vector<8x128xf32>
    %15 = math.sqrt %14 : vector<8x128xf32>
    %16 = vector.extract_strided_slice %13 {offsets = [8, 0], sizes = [8, 128], strides = [1, 1]} : vector<16x128xf32> to vector<8x128xf32>
    %17 = math.sqrt %16 : vector<8x128xf32>
    %18 = arith.subf %15, %17 : vector<8x128xf32>
    %cst_9 = arith.constant 1.000000e+00 : f32
    %19 = vector.broadcast %cst_9 : f32 to vector<8x128xf32>
    %20 = arith.addf %18, %19 : vector<8x128xf32>
    %cst_10 = arith.constant 0.000000e+00 : f32
    %21 = vector.broadcast %cst_10 : f32 to vector<8x128xf32>
    %22 = arith.maximumf %20, %21 : vector<8x128xf32>
    %cst_11 = arith.constant dense<0.000000e+00> : vector<128xf32>
    %23 = vector.multi_reduction <add>, %22, %cst_11 [0] : vector<8x128xf32> to vector<128xf32>
    %24 = vector.shape_cast %23 : vector<128xf32> to vector<1x128xf32>
    %25 = vector.shape_cast %24 : vector<1x128xf32> to vector<1x1x128xf32>
    %c0_12 = arith.constant 0 : index
    %c0_13 = arith.constant 0 : index
    %c0_14 = arith.constant 0 : index
    %26 = vector.load %arg5[%c0_12, %c0_13, %c0_14] : memref<1x1x128xf32, #tpu.memory_space<vmem>>, vector<1x1x128xf32>
    tpu.vector_store %arg5[%c0_12, %c0_13, %c0_14], %25 {strides = array<i32>} : memref<1x1x128xf32, #tpu.memory_space<vmem>>, vector<1x1x128xf32>,
    return
  }
  func.func @transform_0(%arg0: i32) -> (i32, i32) {
    %c0_i32 = arith.constant 0 : i32
    %c0_i32_0 = arith.constant 0 : i32
    return %arg0, %c0_i32 : i32, i32
  }
  func.func @transform_1(%arg0: i32) -> (i32, i32) {
    %c0_i32 = arith.constant 0 : i32
    %c0_i32_0 = arith.constant 0 : i32
    return %arg0, %c0_i32 : i32, i32
  }
  func.func @transform_2(%arg0: i32) -> (i32, i32) {
    %c0_i32 = arith.constant 0 : i32
    %c0_i32_0 = arith.constant 0 : i32
    return %arg0, %c0_i32 : i32, i32
  }
  func.func @transform_3(%arg0: i32) -> (i32, i32) {
    %c0_i32 = arith.constant 0 : i32
    %c0_i32_0 = arith.constant 0 : i32
    %c0_i32_1 = arith.constant 0 : i32
    return %c0_i32, %c0_i32_0 : i32, i32
  }
  func.func @transform_4(%arg0: i32) -> (i32, i32, i32) {
    %c0_i32 = arith.constant 0 : i32
    %c0_i32_0 = arith.constant 0 : i32
    %c0_i32_1 = arith.constant 0 : i32
    return %arg0, %c0_i32, %c0_i32_0 : i32, i32, i32
  }
}

</mosaic_0001>

<bundles_post_ra>
// kernel: tpu_custom_call.1
= control target key start
LH: loop header
LB: loop body
LE: loop exit
PB: predicated region body
PF: predicated region fallthrough
CT: control target
= control target key end

     0   :  { %9 = vsyncpa [#allocation3], 0  ;;  %s363_s0 = inlined_call_operand.hbm [shape: f32[8,32], index: 0, kind: input, shape index: {}]   ;;  %s364_s1 = inlined_call_operand.hbm [shape: f32[8,32], index: 1, kind: input, shape index: {}]   ;;  %s365_s2 = inlined_call_operand.hbm [shape: f32[8,32], index: 2, kind: input, shape index: {}]   ;;  %s366_s3 = inlined_call_operand.hbm [shape: f32[32,128], index: 3, kind: input, shape index: {}]   ;;  %s367_s4 = inlined_call_operand.hbm [shape: f32[1,1,128], index: 4, kind: output, shape index: {}]  }
   0x1   :  { %10 = vsyncpa [#allocation6], 0 }
   0x2   :  { %11 = vsyncpa [#allocation9], 0  ;;  %s29_s17 = sshll.u32 %s364_s1, 4  ;;  %s30_s17 = int_to_ptr.hbm [resolvable:$true] %s29_s17 }
   0x3   :  { %12 = vsyncpa [#allocation4], 0  ;;  %s316_s18 = smov [#allocation5]   ;;  %s18_s22 = sshll.u32 %s363_s0, 4  ;;  %s19_s22 = int_to_ptr.hbm [resolvable:$true] %s18_s22 }
   0x4   :  { %s31_s19 = sshll.u32 %s316_s18, 4  ;;  %s317_s23 = smov [#allocation2]   ;;  %s32_s19 = int_to_ptr.vmem [resolvable:$true] %s31_s19 }
   0x5   :  { %34 = dma.hbm_to_vmem [thread:$0]  %s30_s17, 128, %s32_s19, [#allocation6]  }
   0x6   :  { %s20_s24 = sshll.u32 %s317_s23, 4  ;;  %s40_s27 = sshll.u32 %s365_s2, 4  ;;  %s21_s24 = int_to_ptr.vmem [resolvable:$true] %s20_s24  ;;  %s41_s27 = int_to_ptr.hbm [resolvable:$true] %s40_s27 }
   0x7   :  { %23 = dma.hbm_to_vmem [thread:$0]  %s19_s22, 128, %s21_s24, [#allocation3]  }
   0x8   :  { %s50_s29 = sshll.u32 %s366_s3, 4  ;;  %s318_s30 = smov [#allocation7]   ;;  %s51_s29 = int_to_ptr.hbm [resolvable:$true] %s50_s29 }
   0x9   :  { %s42_s5 = sshll.u32 %s318_s30, 4  ;;  %s319_s0 = smov [#allocation8]   ;;  %s43_s5 = int_to_ptr.vmem [resolvable:$true] %s42_s5 }
   0xa   :  { %45 = dma.hbm_to_vmem [thread:$0]  %s41_s27, 128, %s43_s5, [#allocation6]  }
   0xb   :  { %s52_s6 = sshll.u32 %s319_s0, 4  ;;  %s320_s7 = smov 128   ;;  %s53_s6 = int_to_ptr.vmem [resolvable:$true] %s52_s6 }
   0xc   :  { %s321_s8 = smov 8  }
   0xd   :  { %58 = dma.hbm_to_vmem [thread:$0]  %s51_s29, 512, %s53_s6, [#allocation9], %s320_s7, %s320_s7, %s321_s8  }
   0xe   :  { %308 = dma.done.wait [#allocation3], 128  }
   0xf   :  { %309 = vsyncadd [#allocation3], 4294967168 }
  0x10   :  { %310 = dma.done.wait [#allocation6], 256  }
  0x11   :  { %311 = vsyncadd [#allocation6], 4294967040 }
  0x12   :  { %312 = dma.done.wait [#allocation9], 512  }
  0x13   :  { %313 = vsyncadd [#allocation9], 4294966784  ;;  %v81_v0 = vld [vmem:[#allocation8 + $0x18] sm:$0xff]  ;;  %v80_v1 = vld [vmem:[#allocation8 + $0x10] sm:$0xff]  ;;  %vm88_vm0 = vcmask 261120   ;;  %s322_s2 = smov [#allocation10]  }
  0x14   :  { %107 = vmatpush.msra.mxu0 %v81_v0  ;;  %173 = vmatpush.msra.mxu1 %v81_v0  ;;  %v75_v2 = vld [vmem:[#allocation2] sm:$0xff]  ;;  %v76_v3 = vld [vmem:[#allocation5] sm:$0xff]  ;;  %v77_v6 = vld [vmem:[#allocation7] sm:$0xff]  ;;  %s157_s3 = sshll.u32 %s322_s2, 4  ;;  %s159_s11 = sshll.u32 %s367_s4, 4  ;;  %s158_s3 = int_to_ptr.vmem [resolvable:$true] %s157_s3  ;;  %s160_s11 = int_to_ptr.hbm [resolvable:$true] %s159_s11 }
  0x15   :  { %v79_v4 = vld [vmem:[#allocation8 + $0x8] sm:$0xff]  ;;  %v82_v5 = vsub.f32 %v75_v2, %v76_v3  ;;  %v84_v7 = vsub.f32 %v75_v2, %v77_v6  ;;  %v78_v8 = vld [vmem:[#allocation8] sm:$0xff] }
  0x16   :  { %108 = vmatpush.msra.mxu0 %v80_v1  ;;  %174 = vmatpush.msra.mxu1 %v80_v1 }
  0x17   :  { %v83_v9 = vadd.f32 1e-06, %v82_v5  ;;  %v85_v10 = vadd.f32 1e-06, %v84_v7 }
  0x18   :  { %109 = vmatpush.msra.mxu0 %v79_v4  ;;  %175 = vmatpush.msra.mxu1 %v79_v4 }
  0x19   :  { %v86_v11 = vmul.f32 %v83_v9, %v83_v9  ;;  %v87_v12 = vmul.f32 %v85_v10, %v85_v10 }
  0x1a   :  { %110 = vmatpush.msra.mxu0 %v78_v8  ;;  %176 = vmatpush.msra.mxu1 %v78_v8 }
  0x1b   :  { %171 = vmatmul.msk.f32.vlgmr.msra.gmra.mxu0 %vm88_vm0, %v86_v11  ;;  %172 = vmatmul.msk.f32.vlgmr.msra.gmra.mxu1 %vm88_vm0, %v87_v12 }
  0x98   :  { %v112_v13 = vpop.f32.mrf.mxu0  ;;  %v115_v14 = vpop.f32.mrf.mxu1 }
  0x99   :  { %184 = vrsqrt.f32 %v112_v13  ;;  %vm125_vm1 = vcmp.eq.f32.partialorder %v112_v13, inf  ;;  %v128_v28 = vand.u32 2147483648, %v112_v13  ;;  %vm127_vm2 = vcmp.eq.f32.partialorder %v112_v13, 0.0 }
  0x9a   :  { %186 = vrsqrt.f32 %v115_v14  ;;  %vm137_vm3 = vcmp.eq.f32.partialorder %v115_v14, inf  ;;  %v140_v31 = vand.u32 2147483648, %v115_v14  ;;  %vm139_vm4 = vcmp.eq.f32.partialorder %v115_v14, 0.0 }
  0x9f   :  { %v185_v15 = vpop.eup %184 }
  0xa0   :  { %v187_v16 = vpop.eup %186  ;;  %v119_v17 = vmul.f32 %v185_v15, %v112_v13 }
  0xa1   :  { %v131_v18 = vmul.f32 %v187_v16, %v115_v14 }
  0xa2   :  { %v120_v19 = vmul.f32 %v185_v15, %v119_v17 }
  0xa3   :  { %v132_v20 = vmul.f32 %v187_v16, %v131_v18 }
  0xa4   :  { %v121_v21 = vmul.f32 0.5, %v120_v19 }
  0xa5   :  { %v133_v22 = vmul.f32 0.5, %v132_v20 }
  0xa6   :  { %v122_v23 = vsub.f32 1.5, %v121_v21 }
  0xa7   :  { %v134_v24 = vsub.f32 1.5, %v133_v22 }
  0xa8   :  { %v123_v25 = vmul.f32 %v185_v15, %v122_v23 }
  0xa9   :  { %v135_v26 = vmul.f32 %v187_v16, %v134_v24 }
  0xaa   :  { %v124_v27 = vmul.f32 %v123_v25, %v112_v13 }
  0xab   :  { %v136_v29 = vmul.f32 %v135_v26, %v115_v14 }
  0xac   :  { %v126_v30 = vsel %vm125_vm1, %v112_v13, %v124_v27 }
  0xad   :  { %v138_v32 = vsel %vm137_vm3, %v115_v14, %v136_v29  ;;  %v129_v33 = vsel %vm127_vm2, %v128_v28, %v126_v30 }
  0xae   :  { %v141_v34 = vsel %vm139_vm4, %v140_v31, %v138_v32 }
  0xaf   :  { %v142_v35 = vsub.f32 %v129_v33, %v141_v34 }
  0xb1   :  { %v143_v36 = vadd.f32 1.0, %v142_v35 }
  0xb3   :  { %v144_v37 = vmax.f32 %v143_v36, 0.0 }
  0xb5   :  { %v145_v38 = vrot.slane %v144_v37, 4 }
  0xb7   :  { %v146_v39 = vadd.f32 %v145_v38, %v144_v37 }
  0xb9   :  { %v147_v40 = vrot.slane %v146_v39, 2 }
  0xbb   :  { %v148_v41 = vadd.f32 %v147_v40, %v146_v39 }
  0xbd   :  { %v149_v42 = vrot.slane %v148_v41, 1 }
  0xbf   :  { %v150_v43 = vadd.f32 %v149_v42, %v148_v41 }
  0xc1   :  { %151 = vst [vmem:[#allocation10] sm:$0x1] %v150_v43 }
  0xc2   :  { %162 = dma.vmem_to_hbm [thread:$0]  %s158_s3, 16, %s160_s11, [#allocation4]  }
  0xc3   :  { %314 = dma.done.wait [#allocation4], 16  }
  0xc4   :  { %315 = vsyncadd [#allocation4], 4294967280 }
  0xc5   :  { %167 = vsyncpa [#allocation3], 1 }
  0xc6   :  { %168 = vsyncpa [#allocation6], 1 }
  0xc7   :  { %169 = vsyncpa [#allocation9], 1 }
  0xc8   :  { %170 = vsyncpa [#allocation4], 1 }

</bundles_post_ra>
